<compile_context>
chip_gen: v7x
topology: tpu7x:2x2x1
jax: 0.10.0
libtpu: 0.0.40
codegen_flags: <defaults>
</compile_context>

<pallas_src>
import functools

import jax
import jax.numpy as jnp
from jax import lax
from jax.experimental import pallas as pl
from jax.experimental.pallas import tpu as pltpu


# ----------------------------- activations ---------------------------------
def _apply_act(x, act):
    if act == "linear":
        return x
    if act == "relu":
        return jnp.maximum(x, 0.0)
    if act == "tanh":
        return jnp.tanh(x)
    if act == "elu":
        return jnp.where(x > 0, x, jnp.exp(x) - 1.0)
    if act == "sigmoid":
        return 1.0 / (1.0 + jnp.exp(-x))
    if act == "leaky_relu":
        return jnp.where(x > 0, x, 0.01 * x)
    raise ValueError("unsupported act: %s" % act)


# ------------------------------- fused kernel -------------------------------
def _graphnet_kernel(x_ref, adj_ref, *rest, layer_cfgs):
    """Whole GraphNet forward: all layers, all heads, one invocation.

    rest = (wfc_all_0, wl_cols_0, wr_rows_0, ..., wfc_all_{L-1}, wl_cols_{L-1},
            wr_rows_{L-1}, o_ref)
    """
    w_refs = rest[:-1]
    o_ref = rest[-1]

    # adj[i, j] = 1 means an edge j -> i (row = destination).  int8 in HBM/VMEM;
    # converted once to an additive softmax bias: 0 on edges, -1e9 off edges.
    adj_f = adj_ref[...].astype(jnp.float32)              # (N, N)
    neg_bias = (adj_f - 1.0) * 1e9                        # (N, N), built once

    x = x_ref[...].astype(jnp.float32)                    # (N, Din0)

    for li, (head_num, dout, act, concat) in enumerate(layer_cfgs):
        wfc_all = w_refs[3 * li][...]                     # (Din, H*Dout) bf16
        wl_cols = w_refs[3 * li + 1][...]                 # (H*Dout, H)   bf16
        wr_rows = w_refs[3 * li + 2][...]                 # (H, H*Dout)   bf16

        # AttentionPrepare for every head in one MXU call (heads concatenated
        # along the output feature dim).
        ft = jnp.dot(x.astype(jnp.bfloat16), wfc_all,
                     preferred_element_type=jnp.float32)   # (N, H*Dout) f32
        ft_b = ft.astype(jnp.bfloat16)

        # All heads' destination terms a1 (columns) and source terms a2 (rows)
        # in one MXU call each; Wl/Wr are block-"diagonal" so column/row h only
        # sees head h's slice of ft.
        a1_all = jnp.dot(ft_b, wl_cols,
                         preferred_element_type=jnp.float32)        # (N, H)
        a2_all = lax.dot_general(                                    # (H, N)
            wr_rows, ft_b,
            dimension_numbers=(((1,), (1,)), ((), ())),
            preferred_element_type=jnp.float32)

        heads = []
        for h in range(head_num):
            # GATReduce: masked softmax over incoming neighbors (f32 math).
            s = a1_all[:, h:h + 1] + a2_all[h:h + 1, :]              # (N, N)
            s = jnp.where(s > 0, s, 0.01 * s)                        # leaky_relu
            masked = s + neg_bias                                    # single mask pass
            m = jnp.max(masked, axis=1, keepdims=True)               # (N, 1)
            e = jnp.exp(masked - m)          # non-edges underflow to exactly 0
            denom = jnp.sum(e, axis=1, keepdims=True)                # >= 1 always
            attn = e * pl.reciprocal(denom, approx=True)             # EUP slot

            # SumAggregator of attention-weighted neighbor features + act.
            ft_h = ft_b[:, h * dout:(h + 1) * dout]                  # (N, Dout) bf16
            acc = jnp.dot(attn.astype(jnp.bfloat16), ft_h,
                          preferred_element_type=jnp.float32)        # (N, Dout)
            heads.append(_apply_act(acc, act))

        if concat:
            x = jnp.concatenate(heads, axis=1)                       # torch.cat dim=1
        else:
            x = sum(heads) / float(head_num)                         # average heads

    o_ref[...] = x.astype(o_ref.dtype)


def graphnet_forward(feat, adj_i8, params):
    """Run the whole GraphNet in one pallas_call (everything fits in VMEM)."""
    layer_cfgs = tuple(
        (p["head_num"], p["out_channels"], p["act"], p["concat"]) for p in params)
    weights = []
    for p in params:
        weights += [p["wfc_all"], p["wl_cols"], p["wr_rows"]]

    n = feat.shape[0]
    num_label = params[-1]["out_channels"]
    kernel = functools.partial(_graphnet_kernel, layer_cfgs=layer_cfgs)
    n_in = 2 + len(weights)
    return pl.pallas_call(
        kernel,
        out_shape=jax.ShapeDtypeStruct((n, num_label), jnp.float32),
        in_specs=[pl.BlockSpec(memory_space=pltpu.MemorySpace.VMEM)] * n_in,
        out_specs=pl.BlockSpec(memory_space=pltpu.MemorySpace.VMEM),
    )(feat, adj_i8, *weights)


# ------------------------- model construction / glue ------------------------
def _xavier(key, shape, fan_in, fan_out, gain=1.414):
    std = gain * (2.0 / (fan_in + fan_out)) ** 0.5
    return std * jax.random.normal(key, shape, dtype=jnp.float32)


def build_graphnet_params(actions, num_feat, num_label, layer_nums=3, state_num=5,
                          seed=0):
    """Mirror GraphNet.build_hidden_layers, plus MXU-friendly fused weights."""
    assert len(actions) == layer_nums * state_num
    assert actions[-1] == num_label
    key = jax.random.PRNGKey(seed)
    params = []
    out_channels, head_num = None, None
    for i in range(layer_nums):
        in_channels = num_feat if i == 0 else out_channels * head_num
        attention_type = actions[i * state_num + 0]
        aggregator_type = actions[i * state_num + 1]
        act = actions[i * state_num + 2]
        head_num = int(actions[i * state_num + 3])
        out_channels = int(actions[i * state_num + 4])
        assert attention_type == "gat" and aggregator_type == "sum"
        attention_dim = 1  # 'gat'
        key, k1, k2, k3 = jax.random.split(key, 4)
        # torch nn.Linear weight is (out, in); we store (in, out) -> same math.
        wfc = _xavier(k1, (head_num, in_channels, out_channels),
                      in_channels, out_channels)
        wl = _xavier(k2, (head_num, out_channels, attention_dim),
                     out_channels, attention_dim)
        wr = _xavier(k3, (head_num, out_channels, attention_dim),
                     out_channels, attention_dim)

        # --- fused, bf16 MXU-friendly forms used by the kernel ---------------
        # Wfc_all: heads concatenated on the output dim -> single X @ Wfc_all.
        wfc_all = jnp.concatenate([wfc[h] for h in range(head_num)],
                                  axis=1).astype(jnp.bfloat16)        # (Din, H*Dout)
        # Block-"diagonal" attention weights: column/row h only touches head h.
        wl_cols = jnp.zeros((head_num * out_channels, head_num), jnp.float32)
        wr_rows = jnp.zeros((head_num, head_num * out_channels), jnp.float32)
        for h in range(head_num):
            sl = slice(h * out_channels, (h + 1) * out_channels)
            wl_cols = wl_cols.at[sl, h].set(wl[h, :, 0])
            wr_rows = wr_rows.at[h, sl].set(wr[h, :, 0])
        wl_cols = wl_cols.astype(jnp.bfloat16)
        wr_rows = wr_rows.astype(jnp.bfloat16)

        params.append(dict(
            # per-head f32 weights kept for the pure-JAX reference
            wfc=wfc, wl=wl, wr=wr,
            # fused bf16 weights consumed by the Pallas kernel
            wfc_all=wfc_all, wl_cols=wl_cols, wr_rows=wr_rows,
            head_num=head_num, out_channels=out_channels,
            act=act, concat=(i != layer_nums - 1)))
    return params


# ------------------------------ pure-JAX reference ---------------------------
def _head_ref(x, mask, wfc, wl, wr, act):
    xb = x.astype(jnp.bfloat16)
    ft = jnp.dot(xb, wfc.astype(jnp.bfloat16),
                 preferred_element_type=jnp.float32)
    ftb = ft.astype(jnp.bfloat16)
    a1 = jnp.dot(ftb, wl.astype(jnp.bfloat16),
                 preferred_element_type=jnp.float32)                  # (N, 1)
    a2 = jnp.dot(ftb, wr.astype(jnp.bfloat16),
                 preferred_element_type=jnp.float32)                  # (N, 1)
    s = a1 + a2.T
    s = jnp.where(s > 0, s, 0.01 * s)
    masked = jnp.where(mask, s, -1e30)
    e = jnp.exp(masked - masked.max(axis=1, keepdims=True)) * mask
    attn = e / e.sum(axis=1, keepdims=True)
    acc = jnp.dot(attn.astype(jnp.bfloat16), ftb,
                  preferred_element_type=jnp.float32)
    return _apply_act(acc, act)


def graphnet_ref(feat, adj, params):
    mask = adj > 0
    out = feat
    for layer in params:
        heads = [_head_ref(out, mask, layer["wfc"][h], layer["wl"][h],
                           layer["wr"][h], layer["act"])
                 for h in range(layer["head_num"])]
        if layer["concat"]:
            out = jnp.concatenate(heads, axis=1)
        else:
            out = sum(heads) / len(heads)
    return out


# ----------------------------------- main ------------------------------------
if __name__ == "__main__":
    N_NODES = 16
    NUM_FEAT = 8
    NUM_LABEL = 4
    # actions: [attention, aggregator, act, head_num, out_channels] x 3 layers
    actions = ["gat", "sum", "relu", 2, 8,
               "gat", "sum", "tanh", 2, 8,
               "gat", "sum", "linear", 2, NUM_LABEL]

    key = jax.random.PRNGKey(0)
    kf, _ = jax.random.split(key)
    feat = jax.random.normal(kf, (N_NODES, NUM_FEAT), dtype=jnp.float32)

    # Deterministic ring graph with self-loops: edges (i-1)->i, (i+1)->i, i->i.
    idx = jnp.arange(N_NODES)
    adj = (jnp.zeros((N_NODES, N_NODES), jnp.float32)
           .at[idx, idx].set(1.0)
           .at[idx, (idx - 1) % N_NODES].set(1.0)
           .at[idx, (idx + 1) % N_NODES].set(1.0))
    adj_i8 = adj.astype(jnp.int8)          # int8 adjacency -> 4x less DMA at scale

    params = build_graphnet_params(actions, NUM_FEAT, NUM_LABEL)

    out = graphnet_forward(feat, adj_i8, params)
    out = jax.block_until_ready(out)

    ref = graphnet_ref(feat, adj, params)
    assert out.shape == (N_NODES, NUM_LABEL), out.shape
    # Tolerance absorbs pl.reciprocal(approx=True) + bf16 rounding of the
    # attention weights accumulated over 3 layers (reference uses exact divide).
    assert jnp.allclose(out, ref, atol=5e-2, rtol=5e-2), (
        float(jnp.max(jnp.abs(out - ref))))
    print("KERNEL_OK")
</pallas_src>

<mosaic_0001>
module attributes {stable_mosaic.version = 11 : i64} {
  func.func @_graphnet_kernel(%arg0: memref<16x8xf32, #tpu.memory_space<vmem>>, %arg1: memref<16x16xi8, #tpu.memory_space<vmem>>, %arg2: memref<8x16xbf16, #tpu.memory_space<vmem>>, %arg3: memref<16x2xbf16, #tpu.memory_space<vmem>>, %arg4: memref<2x16xbf16, #tpu.memory_space<vmem>>, %arg5: memref<16x16xbf16, #tpu.memory_space<vmem>>, %arg6: memref<16x2xbf16, #tpu.memory_space<vmem>>, %arg7: memref<2x16xbf16, #tpu.memory_space<vmem>>, %arg8: memref<16x8xbf16, #tpu.memory_space<vmem>>, %arg9: memref<8x2xbf16, #tpu.memory_space<vmem>>, %arg10: memref<2x8xbf16, #tpu.memory_space<vmem>>, %arg11: memref<16x4xf32, #tpu.memory_space<vmem>>) attributes {dimension_semantics = [], scalar_prefetch = 0 : i64, scratch_operands = 0 : i64, tpu.core_type = #tpu.core_type<tc>} {
    %c0 = arith.constant 0 : index
    %c0_0 = arith.constant 0 : index
    %0 = vector.load %arg1[%c0, %c0_0] : memref<16x16xi8, #tpu.memory_space<vmem>>, vector<16x16xi8>
    %1 = arith.sitofp %0 : vector<16x16xi8> to vector<16x16xf32>
    %cst = arith.constant 1.000000e+00 : f32
    %2 = vector.broadcast %cst : f32 to vector<16x16xf32>
    %3 = arith.subf %1, %2 : vector<16x16xf32>
    %cst_1 = arith.constant 1.000000e+09 : f32
    %4 = vector.broadcast %cst_1 : f32 to vector<16x16xf32>
    %5 = arith.mulf %3, %4 : vector<16x16xf32>
    %c0_2 = arith.constant 0 : index
    %c0_3 = arith.constant 0 : index
    %6 = vector.load %arg0[%c0_2, %c0_3] : memref<16x8xf32, #tpu.memory_space<vmem>>, vector<16x8xf32>
    %c0_4 = arith.constant 0 : index
    %c0_5 = arith.constant 0 : index
    %7 = vector.load %arg2[%c0_4, %c0_5] : memref<8x16xbf16, #tpu.memory_space<vmem>>, vector<8x16xbf16>
    %c0_6 = arith.constant 0 : index
    %c0_7 = arith.constant 0 : index
    %8 = vector.load %arg3[%c0_6, %c0_7] : memref<16x2xbf16, #tpu.memory_space<vmem>>, vector<16x2xbf16>
    %c0_8 = arith.constant 0 : index
    %c0_9 = arith.constant 0 : index
    %9 = vector.load %arg4[%c0_8, %c0_9] : memref<2x16xbf16, #tpu.memory_space<vmem>>, vector<2x16xbf16>
    %10 = arith.truncf %6 : vector<16x8xf32> to vector<16x8xbf16>
    %cst_10 = arith.constant dense<0.000000e+00> : vector<16x16xf32>
    %11 = tpu.matmul %10, %7, %cst_10 {dimension_numbers = #tpu.dot_dimension_numbers<[1], [0], [0], [1], [0, 0, 1, 1], [], []>} : vector<16x8xbf16>, vector<8x16xbf16>, vector<16x16xf32> -> vector<16x16xf32>
    %12 = arith.truncf %11 : vector<16x16xf32> to vector<16x16xbf16>
    %cst_11 = arith.constant dense<0.000000e+00> : vector<16x2xf32>
    %13 = tpu.matmul %12, %8, %cst_11 {dimension_numbers = #tpu.dot_dimension_numbers<[1], [0], [0], [1], [0, 0, 1, 1], [], []>} : vector<16x16xbf16>, vector<16x2xbf16>, vector<16x2xf32> -> vector<16x2xf32>
    %cst_12 = arith.constant dense<0.000000e+00> : vector<2x16xf32>
    %14 = tpu.matmul %9, %12, %cst_12 {dimension_numbers = #tpu.dot_dimension_numbers<[1], [1], [0], [0], [0, 0, 1, 0], [], []>} : vector<2x16xbf16>, vector<16x16xbf16>, vector<2x16xf32> -> vector<2x16xf32>
    %15 = vector.extract_strided_slice %13 {offsets = [0, 0], sizes = [16, 1], strides = [1, 1]} : vector<16x2xf32> to vector<16x1xf32>
    %16 = vector.extract_strided_slice %14 {offsets = [0, 0], sizes = [1, 16], strides = [1, 1]} : vector<2x16xf32> to vector<1x16xf32>
    %17 = vector.broadcast %15 : vector<16x1xf32> to vector<16x16xf32>
    %18 = vector.broadcast %16 : vector<1x16xf32> to vector<16x16xf32>
    %19 = arith.addf %17, %18 : vector<16x16xf32>
    %cst_13 = arith.constant 0.000000e+00 : f32
    %20 = vector.broadcast %cst_13 : f32 to vector<16x16xf32>
    %21 = arith.cmpf ogt, %19, %20 : vector<16x16xf32>
    %cst_14 = arith.constant 0.00999999977 : f32
    %22 = vector.broadcast %cst_14 : f32 to vector<16x16xf32>
    %23 = arith.mulf %22, %19 : vector<16x16xf32>
    %24 = arith.select %21, %19, %23 : vector<16x16xi1>, vector<16x16xf32>
    %25 = arith.addf %24, %5 : vector<16x16xf32>
    %cst_15 = arith.constant dense<0xFF800000> : vector<16xf32>
    %26 = vector.multi_reduction <maximumf>, %25, %cst_15 [1] : vector<16x16xf32> to vector<16xf32>
    %27 = vector.shape_cast %26 : vector<16xf32> to vector<16x1xf32>
    %28 = vector.broadcast %27 : vector<16x1xf32> to vector<16x16xf32>
    %29 = arith.subf %25, %28 : vector<16x16xf32>
    %30 = math.exp %29 : vector<16x16xf32>
    %cst_16 = arith.constant dense<0.000000e+00> : vector<16xf32>
    %31 = vector.multi_reduction <add>, %30, %cst_16 [1] : vector<16x16xf32> to vector<16xf32>
    %32 = vector.shape_cast %31 : vector<16xf32> to vector<16x1xf32>
    %33 = tpu.reciprocal %32 {approx = true} : vector<16x1xf32> -> vector<16x1xf32>
    %34 = vector.broadcast %33 : vector<16x1xf32> to vector<16x16xf32>
    %35 = arith.mulf %30, %34 : vector<16x16xf32>
    %36 = vector.extract_strided_slice %12 {offsets = [0, 0], sizes = [16, 8], strides = [1, 1]} : vector<16x16xbf16> to vector<16x8xbf16>
    %37 = arith.truncf %35 : vector<16x16xf32> to vector<16x16xbf16>
    %cst_17 = arith.constant dense<0.000000e+00> : vector<16x8xf32>
    %38 = tpu.matmul %37, %36, %cst_17 {dimension_numbers = #tpu.dot_dimension_numbers<[1], [0], [0], [1], [0, 0, 1, 1], [], []>} : vector<16x16xbf16>, vector<16x8xbf16>, vector<16x8xf32> -> vector<16x8xf32>
    %cst_18 = arith.constant 0.000000e+00 : f32
    %39 = vector.broadcast %cst_18 : f32 to vector<16x8xf32>
    %40 = arith.maximumf %38, %39 : vector<16x8xf32>
    %41 = vector.extract_strided_slice %13 {offsets = [0, 1], sizes = [16, 1], strides = [1, 1]} : vector<16x2xf32> to vector<16x1xf32>
    %42 = vector.extract_strided_slice %14 {offsets = [1, 0], sizes = [1, 16], strides = [1, 1]} : vector<2x16xf32> to vector<1x16xf32>
    %43 = vector.broadcast %41 : vector<16x1xf32> to vector<16x16xf32>
    %44 = vector.broadcast %42 : vector<1x16xf32> to vector<16x16xf32>
    %45 = arith.addf %43, %44 : vector<16x16xf32>
    %cst_19 = arith.constant 0.000000e+00 : f32
    %46 = vector.broadcast %cst_19 : f32 to vector<16x16xf32>
    %47 = arith.cmpf ogt, %45, %46 : vector<16x16xf32>
    %cst_20 = arith.constant 0.00999999977 : f32
    %48 = vector.broadcast %cst_20 : f32 to vector<16x16xf32>
    %49 = arith.mulf %48, %45 : vector<16x16xf32>
    %50 = arith.select %47, %45, %49 : vector<16x16xi1>, vector<16x16xf32>
    %51 = arith.addf %50, %5 : vector<16x16xf32>
    %cst_21 = arith.constant dense<0xFF800000> : vector<16xf32>
    %52 = vector.multi_reduction <maximumf>, %51, %cst_21 [1] : vector<16x16xf32> to vector<16xf32>
    %53 = vector.shape_cast %52 : vector<16xf32> to vector<16x1xf32>
    %54 = vector.broadcast %53 : vector<16x1xf32> to vector<16x16xf32>
    %55 = arith.subf %51, %54 : vector<16x16xf32>
    %56 = math.exp %55 : vector<16x16xf32>
    %cst_22 = arith.constant dense<0.000000e+00> : vector<16xf32>
    %57 = vector.multi_reduction <add>, %56, %cst_22 [1] : vector<16x16xf32> to vector<16xf32>
    %58 = vector.shape_cast %57 : vector<16xf32> to vector<16x1xf32>
    %59 = tpu.reciprocal %58 {approx = true} : vector<16x1xf32> -> vector<16x1xf32>
    %60 = vector.broadcast %59 : vector<16x1xf32> to vector<16x16xf32>
    %61 = arith.mulf %56, %60 : vector<16x16xf32>
    %62 = vector.extract_strided_slice %12 {offsets = [0, 8], sizes = [16, 8], strides = [1, 1]} : vector<16x16xbf16> to vector<16x8xbf16>
    %63 = arith.truncf %61 : vector<16x16xf32> to vector<16x16xbf16>
    %cst_23 = arith.constant dense<0.000000e+00> : vector<16x8xf32>
    %64 = tpu.matmul %63, %62, %cst_23 {dimension_numbers = #tpu.dot_dimension_numbers<[1], [0], [0], [1], [0, 0, 1, 1], [], []>} : vector<16x16xbf16>, vector<16x8xbf16>, vector<16x8xf32> -> vector<16x8xf32>
    %cst_24 = arith.constant 0.000000e+00 : f32
    %65 = vector.broadcast %cst_24 : f32 to vector<16x8xf32>
    %66 = arith.maximumf %64, %65 : vector<16x8xf32>
    %67 = tpu.concatenate %40, %66 in 1 : vector<16x8xf32>, vector<16x8xf32> -> vector<16x16xf32>
    %c0_25 = arith.constant 0 : index
    %c0_26 = arith.constant 0 : index
    %68 = vector.load %arg5[%c0_25, %c0_26] : memref<16x16xbf16, #tpu.memory_space<vmem>>, vector<16x16xbf16>
    %c0_27 = arith.constant 0 : index
    %c0_28 = arith.constant 0 : index
    %69 = vector.load %arg6[%c0_27, %c0_28] : memref<16x2xbf16, #tpu.memory_space<vmem>>, vector<16x2xbf16>
    %c0_29 = arith.constant 0 : index
    %c0_30 = arith.constant 0 : index
    %70 = vector.load %arg7[%c0_29, %c0_30] : memref<2x16xbf16, #tpu.memory_space<vmem>>, vector<2x16xbf16>
    %71 = arith.truncf %67 : vector<16x16xf32> to vector<16x16xbf16>
    %cst_31 = arith.constant dense<0.000000e+00> : vector<16x16xf32>
    %72 = tpu.matmul %71, %68, %cst_31 {dimension_numbers = #tpu.dot_dimension_numbers<[1], [0], [0], [1], [0, 0, 1, 1], [], []>} : vector<16x16xbf16>, vector<16x16xbf16>, vector<16x16xf32> -> vector<16x16xf32>
    %73 = arith.truncf %72 : vector<16x16xf32> to vector<16x16xbf16>
    %cst_32 = arith.constant dense<0.000000e+00> : vector<16x2xf32>
    %74 = tpu.matmul %73, %69, %cst_32 {dimension_numbers = #tpu.dot_dimension_numbers<[1], [0], [0], [1], [0, 0, 1, 1], [], []>} : vector<16x16xbf16>, vector<16x2xbf16>, vector<16x2xf32> -> vector<16x2xf32>
    %cst_33 = arith.constant dense<0.000000e+00> : vector<2x16xf32>
    %75 = tpu.matmul %70, %73, %cst_33 {dimension_numbers = #tpu.dot_dimension_numbers<[1], [1], [0], [0], [0, 0, 1, 0], [], []>} : vector<2x16xbf16>, vector<16x16xbf16>, vector<2x16xf32> -> vector<2x16xf32>
    %76 = vector.extract_strided_slice %74 {offsets = [0, 0], sizes = [16, 1], strides = [1, 1]} : vector<16x2xf32> to vector<16x1xf32>
    %77 = vector.extract_strided_slice %75 {offsets = [0, 0], sizes = [1, 16], strides = [1, 1]} : vector<2x16xf32> to vector<1x16xf32>
    %78 = vector.broadcast %76 : vector<16x1xf32> to vector<16x16xf32>
    %79 = vector.broadcast %77 : vector<1x16xf32> to vector<16x16xf32>
    %80 = arith.addf %78, %79 : vector<16x16xf32>
    %cst_34 = arith.constant 0.000000e+00 : f32
    %81 = vector.broadcast %cst_34 : f32 to vector<16x16xf32>
    %82 = arith.cmpf ogt, %80, %81 : vector<16x16xf32>
    %cst_35 = arith.constant 0.00999999977 : f32
    %83 = vector.broadcast %cst_35 : f32 to vector<16x16xf32>
    %84 = arith.mulf %83, %80 : vector<16x16xf32>
    %85 = arith.select %82, %80, %84 : vector<16x16xi1>, vector<16x16xf32>
    %86 = arith.addf %85, %5 : vector<16x16xf32>
    %cst_36 = arith.constant dense<0xFF800000> : vector<16xf32>
    %87 = vector.multi_reduction <maximumf>, %86, %cst_36 [1] : vector<16x16xf32> to vector<16xf32>
    %88 = vector.shape_cast %87 : vector<16xf32> to vector<16x1xf32>
    %89 = vector.broadcast %88 : vector<16x1xf32> to vector<16x16xf32>
    %90 = arith.subf %86, %89 : vector<16x16xf32>
    %91 = math.exp %90 : vector<16x16xf32>
    %cst_37 = arith.constant dense<0.000000e+00> : vector<16xf32>
    %92 = vector.multi_reduction <add>, %91, %cst_37 [1] : vector<16x16xf32> to vector<16xf32>
    %93 = vector.shape_cast %92 : vector<16xf32> to vector<16x1xf32>
    %94 = tpu.reciprocal %93 {approx = true} : vector<16x1xf32> -> vector<16x1xf32>
    %95 = vector.broadcast %94 : vector<16x1xf32> to vector<16x16xf32>
    %96 = arith.mulf %91, %95 : vector<16x16xf32>
    %97 = vector.extract_strided_slice %73 {offsets = [0, 0], sizes = [16, 8], strides = [1, 1]} : vector<16x16xbf16> to vector<16x8xbf16>
    %98 = arith.truncf %96 : vector<16x16xf32> to vector<16x16xbf16>
    %cst_38 = arith.constant dense<0.000000e+00> : vector<16x8xf32>
    %99 = tpu.matmul %98, %97, %cst_38 {dimension_numbers = #tpu.dot_dimension_numbers<[1], [0], [0], [1], [0, 0, 1, 1], [], []>} : vector<16x16xbf16>, vector<16x8xbf16>, vector<16x8xf32> -> vector<16x8xf32>
    %100 = math.tanh %99 : vector<16x8xf32>
    %101 = vector.extract_strided_slice %74 {offsets = [0, 1], sizes = [16, 1], strides = [1, 1]} : vector<16x2xf32> to vector<16x1xf32>
    %102 = vector.extract_strided_slice %75 {offsets = [1, 0], sizes = [1, 16], strides = [1, 1]} : vector<2x16xf32> to vector<1x16xf32>
    %103 = vector.broadcast %101 : vector<16x1xf32> to vector<16x16xf32>
    %104 = vector.broadcast %102 : vector<1x16xf32> to vector<16x16xf32>
    %105 = arith.addf %103, %104 : vector<16x16xf32>
    %cst_39 = arith.constant 0.000000e+00 : f32
    %106 = vector.broadcast %cst_39 : f32 to vector<16x16xf32>
    %107 = arith.cmpf ogt, %105, %106 : vector<16x16xf32>
    %cst_40 = arith.constant 0.00999999977 : f32
    %108 = vector.broadcast %cst_40 : f32 to vector<16x16xf32>
    %109 = arith.mulf %108, %105 : vector<16x16xf32>
    %110 = arith.select %107, %105, %109 : vector<16x16xi1>, vector<16x16xf32>
    %111 = arith.addf %110, %5 : vector<16x16xf32>
    %cst_41 = arith.constant dense<0xFF800000> : vector<16xf32>
    %112 = vector.multi_reduction <maximumf>, %111, %cst_41 [1] : vector<16x16xf32> to vector<16xf32>
    %113 = vector.shape_cast %112 : vector<16xf32> to vector<16x1xf32>
    %114 = vector.broadcast %113 : vector<16x1xf32> to vector<16x16xf32>
    %115 = arith.subf %111, %114 : vector<16x16xf32>
    %116 = math.exp %115 : vector<16x16xf32>
    %cst_42 = arith.constant dense<0.000000e+00> : vector<16xf32>
    %117 = vector.multi_reduction <add>, %116, %cst_42 [1] : vector<16x16xf32> to vector<16xf32>
    %118 = vector.shape_cast %117 : vector<16xf32> to vector<16x1xf32>
    %119 = tpu.reciprocal %118 {approx = true} : vector<16x1xf32> -> vector<16x1xf32>
    %120 = vector.broadcast %119 : vector<16x1xf32> to vector<16x16xf32>
    %121 = arith.mulf %116, %120 : vector<16x16xf32>
    %122 = vector.extract_strided_slice %73 {offsets = [0, 8], sizes = [16, 8], strides = [1, 1]} : vector<16x16xbf16> to vector<16x8xbf16>
    %123 = arith.truncf %121 : vector<16x16xf32> to vector<16x16xbf16>
    %cst_43 = arith.constant dense<0.000000e+00> : vector<16x8xf32>
    %124 = tpu.matmul %123, %122, %cst_43 {dimension_numbers = #tpu.dot_dimension_numbers<[1], [0], [0], [1], [0, 0, 1, 1], [], []>} : vector<16x16xbf16>, vector<16x8xbf16>, vector<16x8xf32> -> vector<16x8xf32>
    %125 = math.tanh %124 : vector<16x8xf32>
    %126 = tpu.concatenate %100, %125 in 1 : vector<16x8xf32>, vector<16x8xf32> -> vector<16x16xf32>
    %c0_44 = arith.constant 0 : index
    %c0_45 = arith.constant 0 : index
    %127 = vector.load %arg8[%c0_44, %c0_45] : memref<16x8xbf16, #tpu.memory_space<vmem>>, vector<16x8xbf16>
    %c0_46 = arith.constant 0 : index
    %c0_47 = arith.constant 0 : index
    %128 = vector.load %arg9[%c0_46, %c0_47] : memref<8x2xbf16, #tpu.memory_space<vmem>>, vector<8x2xbf16>
    %c0_48 = arith.constant 0 : index
    %c0_49 = arith.constant 0 : index
    %129 = vector.load %arg10[%c0_48, %c0_49] : memref<2x8xbf16, #tpu.memory_space<vmem>>, vector<2x8xbf16>
    %130 = arith.truncf %126 : vector<16x16xf32> to vector<16x16xbf16>
    %cst_50 = arith.constant dense<0.000000e+00> : vector<16x8xf32>
    %131 = tpu.matmul %130, %127, %cst_50 {dimension_numbers = #tpu.dot_dimension_numbers<[1], [0], [0], [1], [0, 0, 1, 1], [], []>} : vector<16x16xbf16>, vector<16x8xbf16>, vector<16x8xf32> -> vector<16x8xf32>
    %132 = arith.truncf %131 : vector<16x8xf32> to vector<16x8xbf16>
    %cst_51 = arith.constant dense<0.000000e+00> : vector<16x2xf32>
    %133 = tpu.matmul %132, %128, %cst_51 {dimension_numbers = #tpu.dot_dimension_numbers<[1], [0], [0], [1], [0, 0, 1, 1], [], []>} : vector<16x8xbf16>, vector<8x2xbf16>, vector<16x2xf32> -> vector<16x2xf32>
    %cst_52 = arith.constant dense<0.000000e+00> : vector<2x16xf32>
    %134 = tpu.matmul %129, %132, %cst_52 {dimension_numbers = #tpu.dot_dimension_numbers<[1], [1], [0], [0], [0, 0, 1, 0], [], []>} : vector<2x8xbf16>, vector<16x8xbf16>, vector<2x16xf32> -> vector<2x16xf32>
    %135 = vector.extract_strided_slice %133 {offsets = [0, 0], sizes = [16, 1], strides = [1, 1]} : vector<16x2xf32> to vector<16x1xf32>
    %136 = vector.extract_strided_slice %134 {offsets = [0, 0], sizes = [1, 16], strides = [1, 1]} : vector<2x16xf32> to vector<1x16xf32>
    %137 = vector.broadcast %135 : vector<16x1xf32> to vector<16x16xf32>
    %138 = vector.broadcast %136 : vector<1x16xf32> to vector<16x16xf32>
    %139 = arith.addf %137, %138 : vector<16x16xf32>
    %cst_53 = arith.constant 0.000000e+00 : f32
    %140 = vector.broadcast %cst_53 : f32 to vector<16x16xf32>
    %141 = arith.cmpf ogt, %139, %140 : vector<16x16xf32>
    %cst_54 = arith.constant 0.00999999977 : f32
    %142 = vector.broadcast %cst_54 : f32 to vector<16x16xf32>
    %143 = arith.mulf %142, %139 : vector<16x16xf32>
    %144 = arith.select %141, %139, %143 : vector<16x16xi1>, vector<16x16xf32>
    %145 = arith.addf %144, %5 : vector<16x16xf32>
    %cst_55 = arith.constant dense<0xFF800000> : vector<16xf32>
    %146 = vector.multi_reduction <maximumf>, %145, %cst_55 [1] : vector<16x16xf32> to vector<16xf32>
    %147 = vector.shape_cast %146 : vector<16xf32> to vector<16x1xf32>
    %148 = vector.broadcast %147 : vector<16x1xf32> to vector<16x16xf32>
    %149 = arith.subf %145, %148 : vector<16x16xf32>
    %150 = math.exp %149 : vector<16x16xf32>
    %cst_56 = arith.constant dense<0.000000e+00> : vector<16xf32>
    %151 = vector.multi_reduction <add>, %150, %cst_56 [1] : vector<16x16xf32> to vector<16xf32>
    %152 = vector.shape_cast %151 : vector<16xf32> to vector<16x1xf32>
    %153 = tpu.reciprocal %152 {approx = true} : vector<16x1xf32> -> vector<16x1xf32>
    %154 = vector.broadcast %153 : vector<16x1xf32> to vector<16x16xf32>
    %155 = arith.mulf %150, %154 : vector<16x16xf32>
    %156 = vector.extract_strided_slice %132 {offsets = [0, 0], sizes = [16, 4], strides = [1, 1]} : vector<16x8xbf16> to vector<16x4xbf16>
    %157 = arith.truncf %155 : vector<16x16xf32> to vector<16x16xbf16>
    %cst_57 = arith.constant dense<0.000000e+00> : vector<16x4xf32>
    %158 = tpu.matmul %157, %156, %cst_57 {dimension_numbers = #tpu.dot_dimension_numbers<[1], [0], [0], [1], [0, 0, 1, 1], [], []>} : vector<16x16xbf16>, vector<16x4xbf16>, vector<16x4xf32> -> vector<16x4xf32>
    %159 = vector.extract_strided_slice %133 {offsets = [0, 1], sizes = [16, 1], strides = [1, 1]} : vector<16x2xf32> to vector<16x1xf32>
    %160 = vector.extract_strided_slice %134 {offsets = [1, 0], sizes = [1, 16], strides = [1, 1]} : vector<2x16xf32> to vector<1x16xf32>
    %161 = vector.broadcast %159 : vector<16x1xf32> to vector<16x16xf32>
    %162 = vector.broadcast %160 : vector<1x16xf32> to vector<16x16xf32>
    %163 = arith.addf %161, %162 : vector<16x16xf32>
    %cst_58 = arith.constant 0.000000e+00 : f32
    %164 = vector.broadcast %cst_58 : f32 to vector<16x16xf32>
    %165 = arith.cmpf ogt, %163, %164 : vector<16x16xf32>
    %cst_59 = arith.constant 0.00999999977 : f32
    %166 = vector.broadcast %cst_59 : f32 to vector<16x16xf32>
    %167 = arith.mulf %166, %163 : vector<16x16xf32>
    %168 = arith.select %165, %163, %167 : vector<16x16xi1>, vector<16x16xf32>
    %169 = arith.addf %168, %5 : vector<16x16xf32>
    %cst_60 = arith.constant dense<0xFF800000> : vector<16xf32>
    %170 = vector.multi_reduction <maximumf>, %169, %cst_60 [1] : vector<16x16xf32> to vector<16xf32>
    %171 = vector.shape_cast %170 : vector<16xf32> to vector<16x1xf32>
    %172 = vector.broadcast %171 : vector<16x1xf32> to vector<16x16xf32>
    %173 = arith.subf %169, %172 : vector<16x16xf32>
    %174 = math.exp %173 : vector<16x16xf32>
    %cst_61 = arith.constant dense<0.000000e+00> : vector<16xf32>
    %175 = vector.multi_reduction <add>, %174, %cst_61 [1] : vector<16x16xf32> to vector<16xf32>
    %176 = vector.shape_cast %175 : vector<16xf32> to vector<16x1xf32>
    %177 = tpu.reciprocal %176 {approx = true} : vector<16x1xf32> -> vector<16x1xf32>
    %178 = vector.broadcast %177 : vector<16x1xf32> to vector<16x16xf32>
    %179 = arith.mulf %174, %178 : vector<16x16xf32>
    %180 = vector.extract_strided_slice %132 {offsets = [0, 4], sizes = [16, 4], strides = [1, 1]} : vector<16x8xbf16> to vector<16x4xbf16>
    %181 = arith.truncf %179 : vector<16x16xf32> to vector<16x16xbf16>
    %cst_62 = arith.constant dense<0.000000e+00> : vector<16x4xf32>
    %182 = tpu.matmul %181, %180, %cst_62 {dimension_numbers = #tpu.dot_dimension_numbers<[1], [0], [0], [1], [0, 0, 1, 1], [], []>} : vector<16x16xbf16>, vector<16x4xbf16>, vector<16x4xf32> -> vector<16x4xf32>
    %cst_63 = arith.constant 0.000000e+00 : f32
    %183 = vector.broadcast %cst_63 : f32 to vector<16x4xf32>
    %184 = arith.addf %183, %158 : vector<16x4xf32>
    %185 = arith.addf %184, %182 : vector<16x4xf32>
    %cst_64 = arith.constant 2.000000e+00 : f32
    %186 = vector.broadcast %cst_64 : f32 to vector<16x4xf32>
    %187 = arith.divf %185, %186 : vector<16x4xf32>
    %c0_65 = arith.constant 0 : index
    %c0_66 = arith.constant 0 : index
    %188 = vector.load %arg11[%c0_65, %c0_66] : memref<16x4xf32, #tpu.memory_space<vmem>>, vector<16x4xf32>
    tpu.vector_store %arg11[%c0_65, %c0_66], %187 {strides = array<i32>} : memref<16x4xf32, #tpu.memory_space<vmem>>, vector<16x4xf32>,
    return
  }
}

</mosaic_0001>

<bundles_post_ra>
// kernel: tpu_custom_call.1
= control target key start
LH: loop header
LB: loop body
LE: loop exit
PB: predicated region body
PF: predicated region fallthrough
CT: control target
= control target key end

     0   :  { %vm60_vm0 = vcmask 1043456   ;;  %v1318_v0 = vmov 0.0   ;;  %vm1319_vm1 = vmmov 0   ;;  %vm56_vm2 = vcmask 64512   ;;  %s1323_s29 = smov 8   ;;  %s1574_s2 = inlined_call_operand.vmem [shape: bf16[8,16], index: 2, kind: input, shape index: {}]   ;;  %s1575_s0 = inlined_call_operand.vmem [shape: f32[16,8], index: 0, kind: input, shape index: {}]   ;;  %s1576_s3 = inlined_call_operand.vmem [shape: bf16[16,2], index: 3, kind: input, shape index: {}]   ;;  %s1577_s4 = inlined_call_operand.vmem [shape: bf16[2,16], index: 4, kind: input, shape index: {}]   ;;  %s1578_s1 = inlined_call_operand.vmem [shape: s8[16,16], index: 1, kind: input, shape index: {}]   ;;  %s1579_s5 = inlined_call_operand.vmem [shape: bf16[16,16], index: 5, kind: input, shape index: {}]   ;;  %s1580_s6 = inlined_call_operand.vmem [shape: bf16[16,2], index: 6, kind: input, shape index: {}]   ;;  %s1581_s7 = inlined_call_operand.vmem [shape: bf16[2,16], index: 7, kind: input, shape index: {}]   ;;  %s1582_s9 = inlined_call_operand.vmem [shape: bf16[8,2], index: 9, kind: input, shape index: {}]   ;;  %s1583_s8 = inlined_call_operand.vmem [shape: bf16[16,8], index: 8, kind: input, shape index: {}]   ;;  %s1584_s10 = inlined_call_operand.vmem [shape: bf16[2,8], index: 10, kind: input, shape index: {}]   ;;  %s1585_s11 = inlined_call_operand.vmem [shape: f32[16,4], index: 11, kind: output, shape index: {}]  }
   0x1   :  { %1141 = vmatprep.subr.bf16.mxu0 %v1318_v0  ;;  %v51_v1 = vld [vmem:[%s1574_s2] sm:$0xf]  ;;  %1143 = vmatprep.mubr.msk.bf16.mxu0 %vm1319_vm1, %v1318_v0  ;;  %v50_v4 = vld [vmem:[%s1575_s0 + $0x8] sm:$0xff]  ;;  %v1320_v7 = vmov 1   ;;  %v1321_v8 = vmov 0   ;;  %vm112_vm3 = vcmask 130048   ;;  %v210_v24 = vlaneseq }
   0x2   :  { %v49_v2 = vld [vmem:[%s1575_s0] sm:$0xff]  ;;  %v62_v3 = vsel %vm60_vm0, %v51_v1, 0  ;;  %1147 = vmatprep.subr.bf16.mxu1 %v1318_v0  ;;  %1149 = vmatprep.mubr.msk.bf16.mxu1 %vm1319_vm1, %v1318_v0 }
   0x3   :  { %1142 = vmatpush3.bf16.msra.mxu0 %v62_v3  ;;  %v55_v5 = vpack.c.bf16 %v50_v4, %v49_v2  ;;  %v1258_v6 = vld [vmem:[%s1576_s3] sm:$0xff]   ;;  %1242 = vset.pattern.permute.xlu0 %v1320_v7  ;;  %v211_v26 = vshrl.u32 %v210_v24, 7 }
   0x4   :  { %1153 = vmatprep.subr.bf16.mxu0 %v1318_v0  ;;  %1148 = vmatpush3.bf16.msra.mxu1 %v1258_v6  ;;  %v54_v15 = vld [vmem:[%s1577_s4] sm:$0x1] }
   0x5   :  { %1159 = vmatprep.subr.bf16.mxu1 %v1318_v0  ;;  %1243 = vset.pattern.permute.xlu1 %v1321_v8  ;;  %v1108_v25 = vld [vmem:[%s1578_s1] sm:$0xf]   ;;  %v1432_v28 = vsub.s32 0, %v211_v26  ;;  %v1434_v29 = vsub.s32 1, %v211_v26  ;;  %s1322_s1 = smov 120  }
   0x6   :  { %1144 = vmatmul.mubr.msk.bf16.vlgmr.msra.gmra.mrb[0].mxu0 %vm56_vm2, %v55_v5  ;;  %v1109_v27 = vunpack.c.0.s8 %v1108_v25  ;;  %v1110_v31 = vunpack.c.1.s8 %v1108_v25 }
   0x7   :  { %1155 = vmatprep.mubr.msk.bf16.mxu0 %vm1319_vm1, %v1318_v0 }
   0x8   :  { %v43_v30 = vcvt.s32.f32 %v1109_v27  ;;  %v44_v35 = vcvt.s32.f32 %v1110_v31 }
   0xa   :  { %v1086_v34 = vadd.f32 -1.0, %v43_v30  ;;  %v1087_v41 = vadd.f32 -1.0, %v44_v35 }
   0xc   :  { %v1438_v40 = vmul.f32 1e+09, %v1086_v34  ;;  %v1441_v51 = vmul.f32 1e+09, %v1087_v41 }
  0xd9   :  { %v98_v9 = vpop.f32.mrb[0].mxu0 }
  0xda   :  { %v1145_v10 = vpop.f32.mrb[1].mxu0 }
  0xdb   :  { %v101_v11 = vpop.f32.mrb[2].mxu0 }
  0xdc   :  { %v1411_v12 = vpack.c.bf16 %v101_v11, %v98_v9  ;;  %v1146_v13 = vpop.f32.mrb[3].mxu0 }
  0xde   :  { %1150 = vmatmul.mubr.msk.bf16.vlgmr.msra.gmra.mrb[0].mxu1 %vm112_vm3, %v1411_v12  ;;  %v114_v14 = vsel %vm112_vm3, %v1411_v12, 0 }
  0xdf   :  { %1160 = vmatpush3.bf16.msra.mxu1 %v1411_v12  ;;  %1154 = vmatpush3.bf16.xpose.msra.mxu0 %v114_v14 }
  0xe0   :  { %1165 = vmatprep.subr.bf16.mxu0 %v1318_v0  ;;  %1161 = vmatprep.mubr.msk.bf16.mxu1 %vm1319_vm1, %v1318_v0 }
  0xe1   :  { %1171 = vmatprep.subr.bf16.mxu1 %v1318_v0 }
  0xe6   :  { %1156 = vmatmul.mubr.msk.bf16.vlgmr.msra.gmra.mrb[4].mxu0 %vm112_vm3, %v54_v15 }
  0xe7   :  { %1167 = vmatprep.mubr.msk.bf16.mxu0 %vm1319_vm1, %v1318_v0 }
 0x1b1   :  { %v150_v16 = vpop.f32.mrb[0].mxu1 }
 0x1b2   :  { %202 = vperm.xlu1 %1243, %v150_v16   ;;  %294 = vperm.xlu0 %1242, %v150_v16   ;;  %v1151_v17 = vpop.f32.mrb[1].mxu1 }
 0x1b3   :  { %v153_v18 = vpop.f32.mrb[2].mxu1 }
 0x1b4   :  { %v1152_v19 = vpop.f32.mrb[3].mxu1 }
 0x1b6   :  { %207 = vperm.xlu1 %1243, %v153_v18   ;;  %298 = vperm.xlu0 %1242, %v153_v18  }
 0x1b9   :  { %v194_v20 = vpop.f32.mrb[4].mxu0 }
 0x1ba   :  { %v1157_v21 = vpop.f32.mrb[5].mxu0  ;;  %1249 = vset.pattern.permute.xlu1 %v1320_v7  ;;  %v213_v32 = vrot.slane %v194_v20, %v1432_v28  ;;  %v304_v33 = vrot.slane %v194_v20, %v1434_v29 }
 0x1bb   :  { %v197_v22 = vpop.f32.mrb[6].mxu0 }
 0x1bc   :  { %v1158_v23 = vpop.f32.mrb[7].mxu0 }
 0x231   :  { %v203_v36 = vpop.permute.xlu1 %202  ;;  %v295_v37 = vpop.permute.xlu0 %294 }
 0x232   :  { %v214_v38 = vadd.f32 %v213_v32, %v203_v36  ;;  %v305_v39 = vadd.f32 %v304_v33, %v295_v37 }
 0x234   :  { %vm216_vm4 = vcmp.gt.f32.partialorder %v214_v38, 0.0  ;;  %v218_v42 = vmul.f32 0.01, %v214_v38  ;;  %vm307_vm5 = vcmp.gt.f32.partialorder %v305_v39, 0.0  ;;  %v309_v43 = vmul.f32 0.01, %v305_v39 }
 0x235   :  { %v208_v44 = vpop.permute.xlu1 %207  ;;  %v299_v45 = vpop.permute.xlu0 %298 }
 0x236   :  { %v215_v46 = vadd.f32 %v213_v32, %v208_v44  ;;  %v306_v47 = vadd.f32 %v304_v33, %v299_v45  ;;  %v311_v48 = vsel %vm307_vm5, %v305_v39, %v309_v43  ;;  %v220_v49 = vsel %vm216_vm4, %v214_v38, %v218_v42  ;;  %v1259_v39 = vld [vmem:[%s1579_s5] sm:$0xff]  }
 0x237   :  { %v313_v50 = vadd.f32 %v311_v48, %v1438_v40  ;;  %v222_v55 = vadd.f32 %v220_v49, %v1438_v40  ;;  %v1260_v42 = vld [vmem:[%s1580_s6] sm:$0xff]  }
 0x238   :  { %vm217_vm6 = vcmp.gt.f32.partialorder %v215_v46, 0.0  ;;  %v219_v52 = vmul.f32 0.01, %v215_v46  ;;  %vm308_vm7 = vcmp.gt.f32.partialorder %v306_v47, 0.0  ;;  %v310_v53 = vmul.f32 0.01, %v306_v47 }
 0x239   :  { %v315_v54 = vsel %vm112_vm3, %v313_v50, -inf  ;;  %v224_v60 = vsel %vm112_vm3, %v222_v55, -inf }
 0x23a   :  { %316 = vmax.xlane.f32.xlu0 %v315_v54  ;;  %v312_v56 = vsel %vm308_vm7, %v306_v47, %v310_v53  ;;  %v221_v57 = vsel %vm217_vm6, %v215_v46, %v219_v52 }
 0x23b   :  { %v314_v58 = vadd.f32 %v312_v56, %v1441_v51  ;;  %v223_v61 = vadd.f32 %v221_v57, %v1441_v51 }
 0x23d   :  { %v318_v59 = vsel %vm112_vm3, %v314_v58, -inf  ;;  %v227_v62 = vsel %vm112_vm3, %v223_v61, -inf }
 0x23e   :  { %319 = vmax.xlane.f32.xlu1 %v318_v59  ;;  %225 = vmax.xlane.f32.xlu0 %v224_v60 }
 0x242   :  { %228 = vmax.xlane.f32.xlu0 %v227_v62 }
 0x2c7   :  { %v317_v63 = vpop.xlane.xlu0 %316 }
 0x2c8   :  { %v321_v1 = vsub.f32 %v313_v50, %v317_v63 }
 0x2ca   :  { %v323_v2 = vmul.f32 1.442695, %v321_v1 }
 0x2cb   :  { %v320_v3 = vpop.xlane.xlu1 %319  ;;  %v226_v4 = vpop.xlane.xlu0 %225 }
 0x2cc   :  { %1262 = vpow2.f32 %v323_v2  ;;  %v322_v5 = vsub.f32 %v314_v58, %v320_v3  ;;  %v230_v6 = vsub.f32 %v222_v55, %v226_v4 }
 0x2ce   :  { %v325_v9 = vmul.f32 1.442695, %v322_v5  ;;  %v232_v10 = vmul.f32 1.442695, %v230_v6  ;;  %v402_v5 = vld [vmem:[%s1581_s7] sm:$0x1] }
 0x2cf   :  { %v229_v11 = vpop.xlane.xlu0 %228 }
 0x2d0   :  { %1264 = vpow2.f32 %v325_v9  ;;  %v231_v13 = vsub.f32 %v223_v61, %v229_v11 }
 0x2d1   :  { %1266 = vpow2.f32 %v232_v10 }
 0x2d2   :  { %v234_v14 = vmul.f32 1.442695, %v231_v13 }
 0x2d4   :  { %1268 = vpow2.f32 %v234_v14 }
 0x2d6   :  { %v1263_v15 = vpop.eup %1262 }
 0x2d7   :  { %v327_v16 = vsel %vm112_vm3, %v1263_v15, 0.0 }
 0x2d8   :  { %328 = vadd.xlane.f32.xlu1 %v327_v16 }
 0x2da   :  { %v1265_v17 = vpop.eup %1264 }
 0x2db   :  { %v330_v18 = vsel %vm112_vm3, %v1265_v17, 0.0  ;;  %v1267_v19 = vpop.eup %1266 }
 0x2dc   :  { %331 = vadd.xlane.f32.xlu0 %v330_v18  ;;  %v236_v20 = vsel %vm112_vm3, %v1267_v19, 0.0 }
 0x2de   :  { %v1269_v21 = vpop.eup %1268 }
 0x2df   :  { %v239_v22 = vsel %vm112_vm3, %v1269_v21, 0.0 }
 0x2e0   :  { %237 = vadd.xlane.f32.xlu0 %v236_v20 }
 0x2e4   :  { %240 = vadd.xlane.f32.xlu0 %v239_v22 }
 0x2e9   :  { %339 = vrot.lane.b32.xlu1 %v1411_v12, %s1322_s1 }
 0x365   :  { %v329_v23 = vpop.xlane.xlu1 %328 }
 0x366   :  { %1270 = vrcp.f32 %v329_v23 }
 0x369   :  { %v340_v24 = vpop.permute.xlu1 %339  ;;  %v332_v25 = vpop.xlane.xlu0 %331 }
 0x36a   :  { %1272 = vrcp.f32 %v332_v25  ;;  %1166 = vmatpush3.bf16.msra.mxu0 %v340_v24 }
 0x36b   :  { %1177 = vmatprep.subr.bf16.mxu0 %v1318_v0 }
 0x36d   :  { %v238_v26 = vpop.xlane.xlu0 %237 }
 0x36e   :  { %1274 = vrcp.f32 %v238_v26 }
 0x370   :  { %v1271_v30 = vpop.eup %1270 }
 0x371   :  { %v241_v27 = vpop.xlane.xlu0 %240  ;;  %v335_v32 = vmul.f32 %v1271_v30, %v1263_v15 }
 0x372   :  { %1276 = vrcp.f32 %v241_v27 }
 0x374   :  { %v1273_v31 = vpop.eup %1272 }
 0x375   :  { %v336_v33 = vmul.f32 %v1273_v31, %v1265_v17 }
 0x377   :  { %v337_v34 = vpack.c.bf16 %v336_v33, %v335_v32 }
 0x378   :  { %v1275_v12 = vpop.eup %1274 }
 0x379   :  { %1168 = vmatmul.mubr.msk.bf16.vlgmr.msra.gmra.mrb[8].mxu0 %vm112_vm3, %v337_v34  ;;  %v244_v36 = vmul.f32 %v1275_v12, %v1267_v19 }
 0x37a   :  { %1179 = vmatprep.mubr.msk.bf16.mxu0 %vm1319_vm1, %v1318_v0  ;;  %1178 = vmatpush3.bf16.msra.mxu0 %v1260_v42 }
 0x37b   :  { %1189 = vmatprep.subr.bf16.mxu0 %v1318_v0 }
 0x37c   :  { %v1277_v35 = vpop.eup %1276 }
 0x37d   :  { %v245_v37 = vmul.f32 %v1277_v35, %v1269_v21 }
 0x37f   :  { %v246_v38 = vpack.c.bf16 %v245_v37, %v244_v36 }
 0x381   :  { %1162 = vmatmul.mubr.msk.bf16.vlgmr.msra.gmra.mrb[4].mxu1 %vm112_vm3, %v246_v38 }
 0x382   :  { %1173 = vmatprep.mubr.msk.bf16.mxu1 %vm1319_vm1, %v1318_v0  ;;  %1172 = vmatpush3.bf16.msra.mxu1 %v1259_v39 }
 0x383   :  { %1183 = vmatprep.subr.bf16.mxu1 %v1318_v0 }
 0x44c   :  { %v379_v41 = vpop.f32.mrb[8].mxu0 }
 0x44d   :  { %v1169_v43 = vpop.f32.mrb[9].mxu0  ;;  %v386_v45 = vmax.f32 %v379_v41, 0.0 }
 0x44e   :  { %v382_v44 = vpop.f32.mrb[10].mxu0 }
 0x44f   :  { %v387_v46 = vmax.f32 %v382_v44, 0.0  ;;  %v1170_v47 = vpop.f32.mrb[11].mxu0 }
 0x451   :  { %v1244_v48 = vpack.i.bf16 %v387_v46, %v386_v45 }
 0x453   :  { %1245 = vrot.lane.b32.xlu0 %v1244_v48, %s1323_s29 }
 0x454   :  { %v284_v49 = vpop.f32.mrb[4].mxu1 }
 0x455   :  { %v1163_v50 = vpop.f32.mrb[5].mxu1  ;;  %v291_v55 = vmax.f32 %v284_v49, 0.0 }
 0x456   :  { %v287_v52 = vpop.f32.mrb[6].mxu1 }
 0x457   :  { %v1164_v53 = vpop.f32.mrb[7].mxu1  ;;  %v292_v56 = vmax.f32 %v287_v52, 0.0 }
 0x4c5   :  { %v1246_v54 = vpop.permute.xlu0 %1245 }
 0x4c6   :  { %v1248_v57 = vunpack.i.h.bf16 %v1246_v54  ;;  %v1247_v58 = vunpack.i.l.bf16 %v1246_v54 }
 0x4c8   :  { %v397_v59 = vsel %vm56_vm2, %v292_v56, %v1248_v57  ;;  %v396_v60 = vsel %vm56_vm2, %v291_v55, %v1247_v58 }
 0x4c9   :  { %v403_v61 = vpack.c.bf16 %v397_v59, %v396_v60 }
 0x4cb   :  { %1174 = vmatmul.mubr.msk.bf16.vlgmr.msra.gmra.mrb[8].mxu1 %vm112_vm3, %v403_v61 }
 0x4cc   :  { %1185 = vmatprep.mubr.msk.bf16.mxu1 %vm1319_vm1, %v1318_v0 }
 0x59e   :  { %v447_v62 = vpop.f32.mrb[8].mxu1 }
 0x59f   :  { %v1175_v63 = vpop.f32.mrb[9].mxu1 }
 0x5a0   :  { %v450_v1 = vpop.f32.mrb[10].mxu1 }
 0x5a1   :  { %v1477_v2 = vpack.c.bf16 %v450_v1, %v447_v62  ;;  %v1176_v3 = vpop.f32.mrb[11].mxu1 }
 0x5a3   :  { %1180 = vmatmul.mubr.msk.bf16.vlgmr.msra.gmra.mrb[12].mxu0 %vm112_vm3, %v1477_v2  ;;  %v462_v4 = vsel %vm112_vm3, %v1477_v2, 0 }
 0x5a4   :  { %1190 = vmatpush3.bf16.msra.mxu0 %v1477_v2  ;;  %1184 = vmatpush3.bf16.xpose.msra.mxu1 %v462_v4 }
 0x5a5   :  { %1195 = vmatprep.subr.bf16.mxu1 %v1318_v0  ;;  %1191 = vmatprep.mubr.msk.bf16.mxu0 %vm1319_vm1, %v1318_v0 }
 0x5a6   :  { %1201 = vmatprep.subr.bf16.mxu0 %v1318_v0 }
 0x5ab   :  { %1186 = vmatmul.mubr.msk.bf16.vlgmr.msra.gmra.mrb[12].mxu1 %vm112_vm3, %v402_v5 }
 0x5ac   :  { %1197 = vmatprep.mubr.msk.bf16.mxu1 %vm1319_vm1, %v1318_v0 }
 0x676   :  { %v498_v6 = vpop.f32.mrb[12].mxu0 }
 0x677   :  { %642 = vperm.xlu1 %1249, %v498_v6   ;;  %v1181_v9 = vpop.f32.mrb[13].mxu0 }
 0x678   :  { %v501_v10 = vpop.f32.mrb[14].mxu0 }
 0x679   :  { %v1182_v11 = vpop.f32.mrb[15].mxu0 }
 0x67b   :  { %646 = vperm.xlu1 %1249, %v501_v10  }
 0x67e   :  { %v542_v13 = vpop.f32.mrb[12].mxu1 }
 0x67f   :  { %1250 = vset.pattern.permute.xlu1 %v1321_v8  ;;  %v1187_v14 = vpop.f32.mrb[13].mxu1  ;;  %v652_v17 = vrot.slane %v542_v13, %v1434_v29  ;;  %v561_v26 = vrot.slane %v542_v13, %v1432_v28  ;;  %v748_v13 = vld [vmem:[%s1582_s9] sm:$0xf] }
 0x680   :  { %550 = vperm.xlu1 %1250, %v498_v6   ;;  %v545_v15 = vpop.f32.mrb[14].mxu1 }
 0x681   :  { %v1188_v16 = vpop.f32.mrb[15].mxu1  ;;  %v806_v15 = vsel %vm60_vm0, %v748_v13, 0  ;;  %vm1079_vm0 = vcmask 31744  }
 0x684   :  { %555 = vperm.xlu1 %1250, %v501_v10  }
 0x688   :  { %1256 = vset.pattern.permute.xlu1 %v1320_v7 }
 0x6f6   :  { %v643_v18 = vpop.permute.xlu1 %642 }
 0x6f7   :  { %v653_v19 = vadd.f32 %v652_v17, %v643_v18 }
 0x6f9   :  { %vm655_vm8 = vcmp.gt.f32.partialorder %v653_v19, 0.0  ;;  %v657_v20 = vmul.f32 0.01, %v653_v19 }
 0x6fa   :  { %v647_v21 = vpop.permute.xlu1 %646 }
 0x6fb   :  { %v654_v22 = vadd.f32 %v652_v17, %v647_v21  ;;  %v659_v23 = vsel %vm655_vm8, %v653_v19, %v657_v20 }
 0x6fc   :  { %v661_v24 = vadd.f32 %v659_v23, %v1438_v40 }
 0x6fd   :  { %vm656_vm9 = vcmp.gt.f32.partialorder %v654_v22, 0.0  ;;  %v658_v25 = vmul.f32 0.01, %v654_v22 }
 0x6fe   :  { %v663_v27 = vsel %vm112_vm3, %v661_v24, -inf }
 0x6ff   :  { %664 = vmax.xlane.f32.xlu0 %v663_v27  ;;  %v551_v30 = vpop.permute.xlu1 %550  ;;  %v660_v7 = vsel %vm656_vm9, %v654_v22, %v658_v25  ;;  %v1261_v22 = vld [vmem:[%s1583_s8] sm:$0xff]  }
 0x700   :  { %v562_v31 = vadd.f32 %v561_v26, %v551_v30  ;;  %v662_v32 = vadd.f32 %v660_v7, %v1441_v51 }
 0x702   :  { %vm564_vm10 = vcmp.gt.f32.partialorder %v562_v31, 0.0  ;;  %v566_v33 = vmul.f32 0.01, %v562_v31  ;;  %v666_v34 = vsel %vm112_vm3, %v662_v32, -inf }
 0x703   :  { %667 = vmax.xlane.f32.xlu1 %v666_v34  ;;  %v556_v12 = vpop.permute.xlu1 %555 }
 0x704   :  { %v563_v35 = vadd.f32 %v561_v26, %v556_v12  ;;  %v568_v36 = vsel %vm564_vm10, %v562_v31, %v566_v33 }
 0x705   :  { %v570_v37 = vadd.f32 %v568_v36, %v1438_v40 }
 0x706   :  { %vm565_vm11 = vcmp.gt.f32.partialorder %v563_v35, 0.0  ;;  %v567_v38 = vmul.f32 0.01, %v563_v35 }
 0x707   :  { %v572_v39 = vsel %vm112_vm3, %v570_v37, -inf }
 0x708   :  { %573 = vmax.xlane.f32.xlu0 %v572_v39  ;;  %v569_v41 = vsel %vm565_vm11, %v563_v35, %v567_v38 }
 0x709   :  { %v571_v42 = vadd.f32 %v569_v41, %v1441_v51 }
 0x70b   :  { %v575_v43 = vsel %vm112_vm3, %v571_v42, -inf }
 0x70c   :  { %576 = vmax.xlane.f32.xlu0 %v575_v43 }
 0x78c   :  { %v665_v44 = vpop.xlane.xlu0 %664 }
 0x78d   :  { %v669_v45 = vsub.f32 %v661_v24, %v665_v44 }
 0x78f   :  { %v671_v46 = vmul.f32 1.442695, %v669_v45 }
 0x790   :  { %v668_v47 = vpop.xlane.xlu1 %667 }
 0x791   :  { %1278 = vpow2.f32 %v671_v46  ;;  %v670_v48 = vsub.f32 %v662_v32, %v668_v47 }
 0x793   :  { %v673_v49 = vmul.f32 1.442695, %v670_v48 }
 0x795   :  { %1280 = vpow2.f32 %v673_v49  ;;  %v574_v50 = vpop.xlane.xlu0 %573  ;;  %v749_v49 = vld [vmem:[%s1584_s10] sm:$0x1]  ;;  %s1324_s10 = smov 124  }
 0x796   :  { %v578_v52 = vsub.f32 %v570_v37, %v574_v50 }
 0x798   :  { %v580_v53 = vmul.f32 1.442695, %v578_v52 }
 0x799   :  { %v577_v54 = vpop.xlane.xlu0 %576 }
 0x79a   :  { %1282 = vpow2.f32 %v580_v53  ;;  %v579_v55 = vsub.f32 %v571_v42, %v577_v54 }
 0x79b   :  { %v1279_v56 = vpop.eup %1278 }
 0x79c   :  { %v582_v57 = vmul.f32 1.442695, %v579_v55  ;;  %v675_v58 = vsel %vm112_vm3, %v1279_v56, 0.0 }
 0x79d   :  { %676 = vadd.xlane.f32.xlu1 %v675_v58 }
 0x79e   :  { %1284 = vpow2.f32 %v582_v57 }
 0x79f   :  { %v1281_v59 = vpop.eup %1280 }
 0x7a0   :  { %v678_v60 = vsel %vm112_vm3, %v1281_v59, 0.0 }
 0x7a1   :  { %679 = vadd.xlane.f32.xlu0 %v678_v60 }
 0x7a4   :  { %v1283_v61 = vpop.eup %1282 }
 0x7a5   :  { %v584_v62 = vsel %vm112_vm3, %v1283_v61, 0.0 }
 0x7a6   :  { %585 = vadd.xlane.f32.xlu0 %v584_v62 }
 0x7a8   :  { %v1285_v63 = vpop.eup %1284 }
 0x7a9   :  { %v587_v1 = vsel %vm112_vm3, %v1285_v63, 0.0 }
 0x7aa   :  { %588 = vadd.xlane.f32.xlu0 %v587_v1 }
 0x7ae   :  { %687 = vrot.lane.b32.xlu1 %v1477_v2, %s1322_s1 }
 0x82a   :  { %v677_v3 = vpop.xlane.xlu1 %676 }
 0x82b   :  { %1286 = vrcp.f32 %v677_v3 }
 0x82e   :  { %v680_v4 = vpop.xlane.xlu0 %679  ;;  %v688_v5 = vpop.permute.xlu1 %687 }
 0x82f   :  { %1288 = vrcp.f32 %v680_v4  ;;  %1196 = vmatpush3.bf16.msra.mxu1 %v688_v5 }
 0x830   :  { %1207 = vmatprep.subr.bf16.mxu1 %v1318_v0 }
 0x833   :  { %v586_v6 = vpop.xlane.xlu0 %585 }
 0x834   :  { %1290 = vrcp.f32 %v586_v6 }
 0x835   :  { %v1287_v9 = vpop.eup %1286 }
 0x836   :  { %v683_v14 = vmul.f32 %v1287_v9, %v1279_v56 }
 0x837   :  { %v589_v10 = vpop.xlane.xlu0 %588 }
 0x838   :  { %1292 = vrcp.f32 %v589_v10 }
 0x839   :  { %v1289_v11 = vpop.eup %1288 }
 0x83a   :  { %v684_v2 = vmul.f32 %v1289_v11, %v1281_v59 }
 0x83c   :  { %v685_v16 = vpack.c.bf16 %v684_v2, %v683_v14 }
 0x83e   :  { %1198 = vmatmul.mubr.msk.bf16.vlgmr.msra.gmra.mrb[16].mxu1 %vm112_vm3, %v685_v16  ;;  %v1291_v17 = vpop.eup %1290 }
 0x83f   :  { %1208 = vmatpush3.bf16.msra.mxu1 %v806_v15  ;;  %1209 = vmatprep.mubr.msk.bf16.mxu1 %vm1319_vm1, %v1318_v0  ;;  %v592_v19 = vmul.f32 %v1291_v17, %v1283_v61 }
 0x840   :  { %1219 = vmatprep.subr.bf16.mxu1 %v1318_v0 }
 0x842   :  { %v1293_v18 = vpop.eup %1292 }
 0x843   :  { %v593_v20 = vmul.f32 %v1293_v18, %v1285_v63 }
 0x845   :  { %v594_v21 = vpack.c.bf16 %v593_v20, %v592_v19 }
 0x847   :  { %1192 = vmatmul.mubr.msk.bf16.vlgmr.msra.gmra.mrb[16].mxu0 %vm112_vm3, %v594_v21 }
 0x848   :  { %1203 = vmatprep.mubr.msk.bf16.mxu0 %vm1319_vm1, %v1318_v0  ;;  %1202 = vmatpush3.bf16.msra.mxu0 %v1261_v22 }
 0x849   :  { %1213 = vmatprep.subr.bf16.mxu0 %v1318_v0 }
 0x911   :  { %v727_v23 = vpop.f32.mrb[16].mxu1 }
 0x912   :  { %v1199_v24 = vpop.f32.mrb[17].mxu1  ;;  %1294 = vtanh.f32 %v727_v23 }
 0x913   :  { %v730_v25 = vpop.f32.mrb[18].mxu1 }
 0x914   :  { %1296 = vtanh.f32 %v730_v25  ;;  %v1200_v26 = vpop.f32.mrb[19].mxu1 }
 0x91a   :  { %v632_v27 = vpop.f32.mrb[16].mxu0 }
 0x91b   :  { %v1193_v30 = vpop.f32.mrb[17].mxu0  ;;  %1298 = vtanh.f32 %v632_v27 }
 0x91c   :  { %v635_v7 = vpop.f32.mrb[18].mxu0  ;;  %v1295_v31 = vpop.eup %1294 }
 0x91d   :  { %v1194_v32 = vpop.f32.mrb[19].mxu0  ;;  %1300 = vtanh.f32 %v635_v7 }
 0x91e   :  { %v1297_v33 = vpop.eup %1296 }
 0x91f   :  { %v1251_v34 = vpack.i.bf16 %v1297_v33, %v1295_v31 }
 0x921   :  { %1252 = vrot.lane.b32.xlu0 %v1251_v34, %s1323_s29 }
 0x925   :  { %v1299_v35 = vpop.eup %1298 }
 0x927   :  { %v1301_v38 = vpop.eup %1300 }
 0x993   :  { %v1253_v12 = vpop.permute.xlu0 %1252 }
 0x994   :  { %v1255_v36 = vunpack.i.h.bf16 %v1253_v12  ;;  %v1254_v37 = vunpack.i.l.bf16 %v1253_v12 }
 0x996   :  { %v744_v39 = vsel %vm56_vm2, %v1299_v35, %v1254_v37  ;;  %v745_v41 = vsel %vm56_vm2, %v1301_v38, %v1255_v36 }
 0x997   :  { %v750_v42 = vpack.c.bf16 %v745_v41, %v744_v39 }
 0x999   :  { %1204 = vmatmul.mubr.msk.bf16.vlgmr.msra.gmra.mrb[20].mxu0 %vm112_vm3, %v750_v42 }
 0x99a   :  { %1215 = vmatprep.mubr.msk.bf16.mxu0 %vm1319_vm1, %v1318_v0 }
 0xa6c   :  { %v794_v43 = vpop.f32.mrb[20].mxu0 }
 0xa6d   :  { %v1205_v44 = vpop.f32.mrb[21].mxu0 }
 0xa6e   :  { %v797_v45 = vpop.f32.mrb[22].mxu0 }
 0xa6f   :  { %v1534_v46 = vpack.c.bf16 %v797_v45, %v794_v43  ;;  %v1206_v47 = vpop.f32.mrb[23].mxu0 }
 0xa71   :  { %1210 = vmatmul.mubr.msk.bf16.vlgmr.msra.gmra.mrb[20].mxu1 %vm56_vm2, %v1534_v46  ;;  %v803_v48 = vsel %vm56_vm2, %v1534_v46, 0 }
 0xa72   :  { %1214 = vmatpush3.bf16.xpose.msra.mxu0 %v803_v48  ;;  %1221 = vmatprep.mubr.msk.bf16.mxu1 %vm1319_vm1, %v1318_v0 }
 0xa79   :  { %1216 = vmatmul.mubr.msk.bf16.vlgmr.msra.gmra.mrb[24].mxu0 %vm56_vm2, %v749_v49 }
 0xb44   :  { %v842_v50 = vpop.f32.mrb[20].mxu1 }
 0xb45   :  { %940 = vperm.xlu1 %1256, %v842_v50   ;;  %v1211_v52 = vpop.f32.mrb[21].mxu1 }
 0xb46   :  { %v845_v53 = vpop.f32.mrb[22].mxu1 }
 0xb47   :  { %v1212_v54 = vpop.f32.mrb[23].mxu1 }
 0xb49   :  { %944 = vperm.xlu1 %1256, %v845_v53  }
 0xb4c   :  { %v886_v55 = vpop.f32.mrb[24].mxu0 }
 0xb4d   :  { %1257 = vset.pattern.permute.xlu1 %v1321_v8  ;;  %v1217_v56 = vpop.f32.mrb[25].mxu0  ;;  %v950_v59 = vrot.slane %v886_v55, %v1434_v29  ;;  %v905_v8 = vrot.slane %v886_v55, %v1432_v28 }
 0xb4e   :  { %894 = vperm.xlu1 %1257, %v842_v50   ;;  %v889_v57 = vpop.f32.mrb[26].mxu0 }
 0xb4f   :  { %v1218_v58 = vpop.f32.mrb[27].mxu0 }
 0xb52   :  { %899 = vperm.xlu1 %1257, %v845_v53  }
 0xbc4   :  { %v941_v60 = vpop.permute.xlu1 %940 }
 0xbc5   :  { %v951_v61 = vadd.f32 %v950_v59, %v941_v60 }
 0xbc7   :  { %vm953_vm12 = vcmp.gt.f32.partialorder %v951_v61, 0.0  ;;  %v955_v62 = vmul.f32 0.01, %v951_v61 }
 0xbc8   :  { %v945_v63 = vpop.permute.xlu1 %944 }
 0xbc9   :  { %v952_v1 = vadd.f32 %v950_v59, %v945_v63  ;;  %v957_v3 = vsel %vm953_vm12, %v951_v61, %v955_v62 }
 0xbca   :  { %v959_v4 = vadd.f32 %v957_v3, %v1438_v40 }
 0xbcb   :  { %vm954_vm13 = vcmp.gt.f32.partialorder %v952_v1, 0.0  ;;  %v956_v5 = vmul.f32 0.01, %v952_v1 }
 0xbcc   :  { %v961_v6 = vsel %vm112_vm3, %v959_v4, -inf }
 0xbcd   :  { %v895_v9 = vpop.permute.xlu1 %894  ;;  %962 = vmax.xlane.f32.xlu0 %v961_v6  ;;  %v958_v10 = vsel %vm954_vm13, %v952_v1, %v956_v5 }
 0xbce   :  { %v906_v11 = vadd.f32 %v905_v8, %v895_v9  ;;  %v960_v29 = vadd.f32 %v958_v10, %v1441_v51 }
 0xbd0   :  { %vm908_vm14 = vcmp.gt.f32.partialorder %v906_v11, 0.0  ;;  %v910_v13 = vmul.f32 0.01, %v906_v11  ;;  %v964_v14 = vsel %vm112_vm3, %v960_v29, -inf }
 0xbd1   :  { %v900_v2 = vpop.permute.xlu1 %899  ;;  %965 = vmax.xlane.f32.xlu1 %v964_v14 }
 0xbd2   :  { %v907_v15 = vadd.f32 %v905_v8, %v900_v2  ;;  %v912_v16 = vsel %vm908_vm14, %v906_v11, %v910_v13 }
 0xbd3   :  { %v914_v17 = vadd.f32 %v912_v16, %v1438_v40 }
 0xbd4   :  { %vm909_vm15 = vcmp.gt.f32.partialorder %v907_v15, 0.0  ;;  %v911_v28 = vmul.f32 0.01, %v907_v15 }
 0xbd5   :  { %v916_v18 = vsel %vm112_vm3, %v914_v17, -inf }
 0xbd6   :  { %917 = vmax.xlane.f32.xlu0 %v916_v18  ;;  %v913_v19 = vsel %vm909_vm15, %v907_v15, %v911_v28 }
 0xbd7   :  { %v915_v20 = vadd.f32 %v913_v19, %v1441_v51 }
 0xbd9   :  { %v919_v21 = vsel %vm112_vm3, %v915_v20, -inf }
 0xbda   :  { %920 = vmax.xlane.f32.xlu0 %v919_v21 }
 0xc5a   :  { %v963_v22 = vpop.xlane.xlu0 %962 }
 0xc5b   :  { %v967_v23 = vsub.f32 %v959_v4, %v963_v22 }
 0xc5d   :  { %v969_v24 = vmul.f32 1.442695, %v967_v23 }
 0xc5e   :  { %v966_v25 = vpop.xlane.xlu1 %965 }
 0xc5f   :  { %1302 = vpow2.f32 %v969_v24  ;;  %v968_v26 = vsub.f32 %v960_v29, %v966_v25 }
 0xc61   :  { %v971_v27 = vmul.f32 1.442695, %v968_v26 }
 0xc63   :  { %1304 = vpow2.f32 %v971_v27  ;;  %v918_v40 = vpop.xlane.xlu0 %917 }
 0xc64   :  { %v922_v30 = vsub.f32 %v914_v17, %v918_v40 }
 0xc66   :  { %v924_v7 = vmul.f32 1.442695, %v922_v30 }
 0xc67   :  { %v921_v31 = vpop.xlane.xlu0 %920 }
 0xc68   :  { %1306 = vpow2.f32 %v924_v7  ;;  %v923_v32 = vsub.f32 %v915_v20, %v921_v31 }
 0xc69   :  { %v1303_v33 = vpop.eup %1302 }
 0xc6a   :  { %v926_v34 = vmul.f32 1.442695, %v923_v32  ;;  %v973_v51 = vsel %vm112_vm3, %v1303_v33, 0.0 }
 0xc6b   :  { %974 = vadd.xlane.f32.xlu1 %v973_v51 }
 0xc6c   :  { %1308 = vpow2.f32 %v926_v34 }
 0xc6d   :  { %v1305_v12 = vpop.eup %1304 }
 0xc6e   :  { %v976_v35 = vsel %vm112_vm3, %v1305_v12, 0.0 }
 0xc6f   :  { %977 = vadd.xlane.f32.xlu0 %v976_v35 }
 0xc72   :  { %v1307_v36 = vpop.eup %1306 }
 0xc73   :  { %v928_v37 = vsel %vm112_vm3, %v1307_v36, 0.0 }
 0xc74   :  { %929 = vadd.xlane.f32.xlu1 %v928_v37 }
 0xc76   :  { %v1309_v38 = vpop.eup %1308 }
 0xc77   :  { %v931_v39 = vsel %vm112_vm3, %v1309_v38, 0.0 }
 0xc78   :  { %932 = vadd.xlane.f32.xlu0 %v931_v39 }
 0xc85   :  { %985 = vrot.lane.b32.xlu1 %v1534_v46, %s1324_s10 }
 0xcf8   :  { %v975_v41 = vpop.xlane.xlu1 %974 }
 0xcf9   :  { %1310 = vrcp.f32 %v975_v41 }
 0xcfc   :  { %v978_v42 = vpop.xlane.xlu0 %977 }
 0xcfd   :  { %1312 = vrcp.f32 %v978_v42 }
 0xd01   :  { %v930_v43 = vpop.xlane.xlu1 %929 }
 0xd03   :  { %v1311_v44 = vpop.eup %1310 }
 0xd04   :  { %v981_v49 = vmul.f32 %v1311_v44, %v1303_v33 }
 0xd05   :  { %v986_v45 = vpop.permute.xlu1 %985  ;;  %v933_v47 = vpop.xlane.xlu0 %932 }
 0xd06   :  { %1314 = vrcp.f32 %v933_v47  ;;  %1220 = vmatpush3.bf16.msra.mxu1 %v986_v45 }
 0xd07   :  { %v1313_v48 = vpop.eup %1312  ;;  %1316 = vrcp.f32 %v930_v43  ;;  %1225 = vmatprep.subr.bf16.mxu1 %v1318_v0 }
 0xd08   :  { %v982_v50 = vmul.f32 %v1313_v48, %v1305_v12 }
 0xd0a   :  { %v983_v52 = vpack.c.bf16 %v982_v50, %v981_v49 }
 0xd0c   :  { %1222 = vmatmul.mubr.msk.bf16.vlgmr.msra.gmra.mrb[24].mxu1 %vm112_vm3, %v983_v52 }
 0xd0d   :  { %1226 = vmatpush3.bf16.msra.mxu1 %v1534_v46  ;;  %1227 = vmatprep.mubr.msk.bf16.mxu1 %vm1319_vm1, %v1318_v0 }
 0xd10   :  { %v1315_v53 = vpop.eup %1314 }
 0xd11   :  { %v1317_v54 = vpop.eup %1316  ;;  %v937_v55 = vmul.f32 %v1315_v53, %v1309_v38 }
 0xd12   :  { %v936_v56 = vmul.f32 %v1317_v54, %v1307_v36 }
 0xd14   :  { %v938_v57 = vpack.c.bf16 %v937_v55, %v936_v56 }
 0xd18   :  { %1228 = vmatmul.mubr.msk.bf16.vlgmr.msra.gmra.mrb[24].mxu1 %vm112_vm3, %v938_v57 }
 0xdeb   :  { %v1069_v58 = vpop.f32.mrb[24].mxu1 }
 0xdec   :  { %v1077_v59 = vmul.f32 0.5, %v1069_v58  ;;  %v1229_v60 = vpop.f32.mrb[25].mxu1 }
 0xded   :  { %v1072_v61 = vpop.f32.mrb[26].mxu1 }
 0xdee   :  { %1080 = vst.msk [vmem:[%s1585_s11] sm:$0xff] %vm1079_vm0, %v1077_v59  ;;  %v1078_v46 = vmul.f32 0.5, %v1072_v61  ;;  %v1230_v62 = vpop.f32.mrb[27].mxu1 }
 0xdf0   :  { %1081 = vst.msk [vmem:[%s1585_s11 + $0x8] sm:$0xff] %vm1079_vm0, %v1078_v46 }

</bundles_post_ra>
